<compile_context>
chip_gen: v7x
topology: tpu7x:2x2x1
jax: 0.10.0
libtpu: 0.0.40
codegen_flags: <defaults>
</compile_context>

<pallas_src>
import functools

import jax
import jax.numpy as jnp
import numpy as np
from jax.experimental import pallas as pl
from jax.experimental.pallas import tpu as pltpu


_SUBLANE = 8           # f32 sublane packing (bf16 would ideally use 16)
_ACC_TAPS_MIN_C = 64   # channel count at which we stop materializing the im2col slab


def _round_up(n, m):
    return -(-n // m) * m


def _pick_vmem_limit_bytes():
    """3/4 of physical VMEM capped at 100 MiB; conservative 48 MiB fallback."""
    try:
        phys = int(pltpu.get_tpu_info().vmem_capacity_bytes)
        return int(min(phys * 3 // 4, 100 * 1024 * 1024))
    except Exception:
        return 48 * 1024 * 1024   # safe on every generation (v7x has 64 MiB)


_VMEM_LIMIT_BYTES = _pick_vmem_limit_bytes()


# --------------------------- weight preparation ----------------------------- #

def _to_im2col_weight(w_hwio):
    """(3, 3, Cin, Cout) -> (Cout, 9*Cin); column order (dy*3 + dx)*Cin + i."""
    kh, kw, ci, co = w_hwio.shape
    return jnp.transpose(w_hwio, (3, 0, 1, 2)).reshape(co, kh * kw * ci)


def _to_tap_weights(w_hwio):
    """(3, 3, Cin, Cout) -> (9, Cout, Cin); tap index = dy*3 + dx."""
    kh, kw, ci, co = w_hwio.shape
    return jnp.transpose(w_hwio.reshape(kh * kw, ci, co), (0, 2, 1))


def _fold_upsample_conv_weights(w_hwio):
    """Fold `conv3x3(pad=1) o nearest_upsample_2x` into 4 parity 3x3 convs.

    Returns (2, 2, 3, 3, Cin, Cout); entry [p, q] is the effective low-res
    kernel producing output pixels (2h+p, 2w+q).  Output row 2h+p, tap dy reads
    upsampled row 2h+p+dy-1, i.e. low-res row h + (p+dy-1)//2, so taps that
    collapse onto the same low-res offset simply add their weights.  Zero
    padding commutes with the folding.
    """
    folded = jnp.zeros((2, 2) + w_hwio.shape, w_hwio.dtype)
    for p in range(2):
        for q in range(2):
            for dy in range(3):
                ry = (p + dy - 1) // 2 + 1
                for dx in range(3):
                    rx = (q + dx - 1) // 2 + 1
                    folded = folded.at[p, q, ry, rx].add(w_hwio[dy, dx])
    return folded


def _pad_io(w_hwio, ci_pad, co_pad):
    ci, co = w_hwio.shape[2], w_hwio.shape[3]
    return jnp.pad(w_hwio, ((0, 0), (0, 0), (0, ci_pad - ci), (0, co_pad - co)))


# ------------------------------ Pallas kernel ------------------------------- #

def _res_upsample_kernel(x_ref, wx_ref, w2_ref, b1_ref, b2_ref, bsc_ref, o_ref,
                         *, H, W, cin, cin_pad, cout, cout_pad):
    """Fused ResUpsampleBlock for one batch element.

    x_ref  : (1, cin, H*W)     low-res input, channels on sublanes, H*W on lanes.
    wx_ref : conv1 + folded-shortcut stacked weights.
             2D (cout_pad+4*cout, 9*cin_pad)  -> im2col-slab path (small C), or
             3D (9, cout_pad+4*cout, cin_pad) -> accumulate-per-tap path.
    w2_ref : conv2 folded with the 2x upsample, 4 parities fused.
             2D (4*cout, 9*cout_pad) or 3D (9, 4*cout, cout_pad).
    b*_ref : f32 biases; b1 (cout_pad,1); b2/bsc tiled per parity (4*cout,1).
    o_ref  : (1, 4*cout, H*W)  rows [pq*cout:(pq+1)*cout] hold output pixels
             (2h+p, 2w+q) with pq = 2p+q.
    """
    S = H * W
    cdt = x_ref.dtype

    # Column-boundary masks, computed once and shared by both convolutions.
    col = jax.lax.broadcasted_iota(jnp.int32, (1, S), 1) % W
    left_ok = col >= 1            # source column w-1 exists
    right_ok = col <= W - 2       # source column w+1 exists

    def conv3x3(w, a):
        """3x3 'same' conv as MXU matmul(s).  a: (C, S) -> (M, S) in f32."""
        C = a.shape[0]
        zp = jnp.zeros((C, W + 1), a.dtype)
        apad = jnp.concatenate([zp, a, zp], axis=1)          # (C, S + 2W + 2)
        left_m = jnp.broadcast_to(left_ok, (C, S))           # one broadcast per conv
        right_m = jnp.broadcast_to(right_ok, (C, S))

        def tap(dy, dx):
            d = (dy - 1) * W + (dx - 1)
            t = apad[:, W + 1 + d: W + 1 + d + S]            # shift via flat offset
            if dx == 0:
                t = jnp.where(left_m, t, 0.0)                # mask column wrap-around
            elif dx == 2:
                t = jnp.where(right_m, t, 0.0)
            return t

        if w.ndim == 2:
            # Small C: materialize the (9*C, S) slab, ONE MXU matmul.
            patches = jnp.concatenate(
                [tap(dy, dx) for dy in range(3) for dx in range(3)], axis=0)
            return jnp.dot(w, patches, preferred_element_type=jnp.float32)
        # Large C: never materialize the slab; 9 accumulating MXU matmuls.
        acc = jnp.zeros((w.shape[1], S), jnp.float32)
        k = 0
        for dy in range(3):
            for dx in range(3):
                acc = acc + jnp.dot(w[k], tap(dy, dx),
                                    preferred_element_type=jnp.float32)
                k += 1
        return acc

    x = x_ref[0]                                             # (cin, S)
    if cin_pad > cin:                                        # sublane-align the taps
        x = jnp.concatenate([x, jnp.zeros((cin_pad - cin, S), cdt)], axis=0)

    # conv1 and the (upsample-folded) shortcut share the im2col of x ->
    # ONE stacked matmul with M = cout_pad + 4*cout.
    rx = conv3x3(wx_ref[...], x)
    t1 = jnp.maximum(rx[:cout_pad] + b1_ref[...], 0.0)       # relu(conv1 + b1)
    short = rx[cout_pad:]                                    # folded shortcut (4*cout, S)

    # conv2 folded with the 2x upsample: all four parities in ONE matmul.
    main = conv3x3(w2_ref[...], t1.astype(cdt))              # (4*cout, S)
    out = jnp.maximum(main + b2_ref[...], 0.0) + short + bsc_ref[...]
    o_ref[0] = out.astype(o_ref.dtype)                       # single lane-dense store


# --------------------------- pallas_call wrapper ---------------------------- #

@functools.partial(jax.jit,
                   static_argnames=("H", "W", "cin", "cin_pad", "cout", "cout_pad"))
def _res_upsample_pallas(x_flat, wx, w2, b1, b2, bsc, *,
                         H, W, cin, cin_pad, cout, cout_pad):
    B = x_flat.shape[0]
    S = H * W
    m_wx = cout_pad + 4 * cout
    kernel = functools.partial(_res_upsample_kernel, H=H, W=W, cin=cin,
                               cin_pad=cin_pad, cout=cout, cout_pad=cout_pad)

    act_bytes = jnp.dtype(x_flat.dtype).itemsize
    w_bytes = jnp.dtype(wx.dtype).itemsize
    cost = pl.CostEstimate(
        flops=2 * B * S * (m_wx * 9 * cin_pad + 4 * cout * 9 * cout_pad),
        transcendentals=0,
        bytes_accessed=(x_flat.size + B * 4 * cout * S) * act_bytes
                       + (wx.size + w2.size) * w_bytes
                       + (b1.size + b2.size + bsc.size) * 4)

    def const_spec(arr):
        nd = arr.ndim
        return pl.BlockSpec(arr.shape, lambda b, _nd=nd: (0,) * _nd)

    return pl.pallas_call(
        kernel,
        out_shape=jax.ShapeDtypeStruct((B, 4 * cout, S), x_flat.dtype),
        grid=(B,),
        in_specs=[
            pl.BlockSpec((1, cin, S), lambda b: (b, 0, 0)),
            const_spec(wx),
            const_spec(w2),
            const_spec(b1),
            const_spec(b2),
            const_spec(bsc),
        ],
        out_specs=pl.BlockSpec((1, 4 * cout, S), lambda b: (b, 0, 0)),
        compiler_params=pltpu.CompilerParams(
            dimension_semantics=("parallel",),          # batch -> megacore
            vmem_limit_bytes=_VMEM_LIMIT_BYTES),
        cost_estimate=cost,
    )(x_flat, wx, w2, b1, b2, bsc)


# --------------------------------- Module ----------------------------------- #

class ResUpsampleBlockPallas:
    """Pallas port of ResUpsampleBlock(in_ch, out_ch, 3, activation='relu',
    norm='none'): shortcut = conv(up2x(x)); out = relu(conv2(up2x(relu(conv1(x)))));
    returns shortcut + out."""

    def __init__(self, in_channels, out_channels, filter_size=3, *, key):
        assert filter_size == 3, "only filter_size=3 (padding=1) supported"
        self.cin, self.cout = in_channels, out_channels
        self.cin_pad = _round_up(in_channels, _SUBLANE)
        self.cout_pad = _round_up(out_channels, _SUBLANE)
        ks = jax.random.split(key, 6)

        def init_conv(kw, kb, cin, cout):
            fan_in = cin * 3 * 3
            bound = 1.0 / np.sqrt(fan_in)
            w = jax.random.uniform(kw, (3, 3, cin, cout), jnp.float32, -bound, bound)
            b = jax.random.uniform(kb, (cout,), jnp.float32, -bound, bound)
            return w, b

        self.w_sc, self.b_sc = init_conv(ks[0], ks[1], in_channels, out_channels)
        self.w1, self.b1 = init_conv(ks[2], ks[3], in_channels, out_channels)
        self.w2, self.b2 = init_conv(ks[4], ks[5], out_channels, out_channels)

        # ---- kernel-layout parameters (computed once at init) ----
        wscf = _fold_upsample_conv_weights(self.w_sc)   # (2,2,3,3,cin,cout)
        w2f = _fold_upsample_conv_weights(self.w2)      # (2,2,3,3,cout,cout)

        w1_pad = _pad_io(self.w1, self.cin_pad, self.cout_pad)
        wsc_pads = [_pad_io(wscf[p, q], self.cin_pad, self.cout)
                    for p in (0, 1) for q in (0, 1)]
        w2_pads = [_pad_io(w2f[p, q], self.cout_pad, self.cout)
                   for p in (0, 1) for q in (0, 1)]

        # conv1 + folded shortcut, stacked (M = cout_pad + 4*cout).
        if self.cin_pad >= _ACC_TAPS_MIN_C:   # accumulate-per-tap layout (9, M, C)
            self._wx_k = jnp.concatenate(
                [_to_tap_weights(w1_pad)] + [_to_tap_weights(w) for w in wsc_pads],
                axis=1)
        else:                                  # im2col-slab layout (M, 9*C)
            self._wx_k = jnp.concatenate(
                [_to_im2col_weight(w1_pad)] + [_to_im2col_weight(w) for w in wsc_pads],
                axis=0)

        # conv2 folded with the upsample, all four parities fused (M = 4*cout).
        if self.cout_pad >= _ACC_TAPS_MIN_C:
            self._w2_k = jnp.concatenate([_to_tap_weights(w) for w in w2_pads], axis=1)
        else:
            self._w2_k = jnp.concatenate([_to_im2col_weight(w) for w in w2_pads], axis=0)

        self._b1_k = jnp.pad(self.b1, (0, self.cout_pad - self.cout)).reshape(-1, 1)
        self._b2_k = jnp.tile(self.b2, 4).reshape(-1, 1)
        self._bsc_k = jnp.tile(self.b_sc, 4).reshape(-1, 1)

    def __call__(self, x_nchw):
        B, cin, H, W = x_nchw.shape
        assert cin == self.cin
        cdt = x_nchw.dtype   # pass a bf16 input for the bf16 path
        y_flat = _res_upsample_pallas(
            x_nchw.reshape(B, cin, H * W),
            self._wx_k.astype(cdt), self._w2_k.astype(cdt),
            self._b1_k, self._b2_k, self._bsc_k,
            H=H, W=W, cin=cin, cin_pad=self.cin_pad,
            cout=self.cout, cout_pad=self.cout_pad)          # (B, 4*cout, H*W)
        # Lane-dense parity slab -> NCHW: layout plumbing in the wrapper.
        y = y_flat.reshape(B, 2, 2, self.cout, H, W)
        y = jnp.transpose(y, (0, 3, 4, 1, 5, 2)).reshape(B, self.cout, 2 * H, 2 * W)
        return y


# ----------------------------- Reference & main ------------------------------ #

def _ref_conv(x_nhwc, w_hwio, b):
    y = jax.lax.conv_general_dilated(
        x_nhwc, w_hwio, window_strides=(1, 1), padding=((1, 1), (1, 1)),
        dimension_numbers=("NHWC", "HWIO", "NHWC"))
    return y + b[None, None, None, :]


def _upsample2x(x_nhwc):
    return jnp.repeat(jnp.repeat(x_nhwc, 2, axis=1), 2, axis=2)


def _ref_forward(block, x_nchw):
    x = jnp.transpose(x_nchw, (0, 2, 3, 1))
    out = jax.nn.relu(_ref_conv(x, block.w1, block.b1))
    out = jax.nn.relu(_ref_conv(_upsample2x(out), block.w2, block.b2))
    shortcut = _ref_conv(_upsample2x(x), block.w_sc, block.b_sc)
    return jnp.transpose(shortcut + out, (0, 3, 1, 2))


if __name__ == "__main__":
    key = jax.random.PRNGKey(0)
    k_x, k_p, k_x2, k_p2 = jax.random.split(key, 4)

    # ---- Config 1: small channels (im2col-slab path), f32 and bf16 ----
    B, Cin, Cout, H, W = 2, 4, 8, 16, 16
    x = jax.random.normal(k_x, (B, Cin, H, W), jnp.float32)   # NCHW, like PyTorch
    block = ResUpsampleBlockPallas(Cin, Cout, 3, key=k_p)

    y = jax.block_until_ready(block(x))
    assert y.shape == (B, Cout, 2 * H, 2 * W), y.shape
    y_ref = jax.block_until_ready(_ref_forward(block, x))
    err = float(jnp.max(jnp.abs(y - y_ref)))
    if not np.isfinite(err) or err > 1e-2:
        raise RuntimeError(f"Pallas f32 mismatch (small): max abs err = {err}")

    y_bf16 = jax.block_until_ready(block(x.astype(jnp.bfloat16)))
    err_bf16 = float(jnp.max(jnp.abs(y_bf16.astype(jnp.float32) - y_ref)))
    if not np.isfinite(err_bf16) or err_bf16 > 2e-1:
        raise RuntimeError(f"Pallas bf16 mismatch (small): max abs err = {err_bf16}")

    # ---- Config 2: channel counts >= 64 exercise the accumulate-per-tap path ----
    B2, C2, H2, W2 = 1, 64, 16, 16
    x2 = jax.random.normal(k_x2, (B2, C2, H2, W2), jnp.float32)
    block2 = ResUpsampleBlockPallas(C2, C2, 3, key=k_p2)

    y2 = jax.block_until_ready(block2(x2))
    assert y2.shape == (B2, C2, 2 * H2, 2 * W2), y2.shape
    y2_ref = jax.block_until_ready(_ref_forward(block2, x2))
    err2 = float(jnp.max(jnp.abs(y2 - y2_ref)))
    if not np.isfinite(err2) or err2 > 1e-1:
        raise RuntimeError(f"Pallas f32 mismatch (large): max abs err = {err2}")

    print("KERNEL_OK")
</pallas_src>

<mosaic_0001>
module attributes {stable_mosaic.version = 11 : i64} {
  func.func @_res_upsample_kernel(%arg0: i32, %arg1: memref<1x4x256xf32, #tpu.memory_space<vmem>>, %arg2: memref<40x72xf32, #tpu.memory_space<vmem>>, %arg3: memref<32x72xf32, #tpu.memory_space<vmem>>, %arg4: memref<8x1xf32, #tpu.memory_space<vmem>>, %arg5: memref<32x1xf32, #tpu.memory_space<vmem>>, %arg6: memref<32x1xf32, #tpu.memory_space<vmem>>, %arg7: memref<1x32x256xf32, #tpu.memory_space<vmem>>) attributes {dimension_semantics = [#tpu.dimension_semantics<parallel>], iteration_bounds = array<i64: 2>, scalar_prefetch = 0 : i64, scratch_operands = 0 : i64, tpu.core_type = #tpu.core_type<tc>, window_params = [{transform_indices = @transform_0, window_bounds = array<i64: 1, 4, 256>}, {pipeline_mode = #tpu.pipeline_mode<synchronous>, transform_indices = @transform_1, window_bounds = array<i64: 40, 72>}, {pipeline_mode = #tpu.pipeline_mode<synchronous>, transform_indices = @transform_2, window_bounds = array<i64: 32, 72>}, {pipeline_mode = #tpu.pipeline_mode<synchronous>, transform_indices = @transform_3, window_bounds = array<i64: 8, 1>}, {pipeline_mode = #tpu.pipeline_mode<synchronous>, transform_indices = @transform_4, window_bounds = array<i64: 32, 1>}, {pipeline_mode = #tpu.pipeline_mode<synchronous>, transform_indices = @transform_5, window_bounds = array<i64: 32, 1>}, {transform_indices = @transform_6, window_bounds = array<i64: 1, 32, 256>}]} {
    %0 = tpu.iota {dimensions = array<i32: 1>} : vector<1x256xi32>
    %c16_i32 = arith.constant 16 : i32
    %c0_i32 = arith.constant 0 : i32
    %1 = arith.cmpi eq, %c16_i32, %c0_i32 : i32
    %c1_i32 = arith.constant 1 : i32
    %2 = arith.select %1, %c1_i32, %c16_i32 : i32
    %3 = vector.broadcast %2 : i32 to vector<1x256xi32>
    %4 = arith.remsi %0, %3 : vector<1x256xi32>
    %c0_i32_0 = arith.constant 0 : i32
    %5 = vector.broadcast %c0_i32_0 : i32 to vector<1x256xi32>
    %6 = arith.cmpi ne, %4, %5 : vector<1x256xi32>
    %c0_i32_1 = arith.constant 0 : i32
    %7 = vector.broadcast %c0_i32_1 : i32 to vector<1x256xi32>
    %8 = arith.cmpi slt, %4, %7 : vector<1x256xi32>
    %c0_i32_2 = arith.constant 0 : i32
    %9 = arith.cmpi slt, %2, %c0_i32_2 : i32
    %10 = vector.broadcast %9 : i1 to vector<1x256xi1>
    %11 = vector.broadcast %10 : vector<1x256xi1> to vector<1x256xi1>
    %12 = arith.xori %8, %11 : vector<1x256xi1>
    %13 = arith.andi %12, %6 : vector<1x256xi1>
    %14 = vector.broadcast %2 : i32 to vector<1x256xi32>
    %15 = arith.addi %4, %14 : vector<1x256xi32>
    %16 = arith.select %13, %15, %4 : vector<1x256xi1>, vector<1x256xi32>
    %c1_i32_3 = arith.constant 1 : i32
    %17 = vector.broadcast %c1_i32_3 : i32 to vector<1x256xi32>
    %18 = arith.cmpi sge, %16, %17 : vector<1x256xi32>
    %c14_i32 = arith.constant 14 : i32
    %19 = vector.broadcast %c14_i32 : i32 to vector<1x256xi32>
    %20 = arith.cmpi sle, %16, %19 : vector<1x256xi32>
    %c0 = arith.constant 0 : index
    %c0_4 = arith.constant 0 : index
    %c0_5 = arith.constant 0 : index
    %21 = vector.load %arg1[%c0, %c0_4, %c0_5] : memref<1x4x256xf32, #tpu.memory_space<vmem>>, vector<1x4x256xf32>
    %22 = vector.shape_cast %21 : vector<1x4x256xf32> to vector<4x256xf32>
    %cst = arith.constant 0.000000e+00 : f32
    %23 = vector.broadcast %cst : f32 to vector<4x256xf32>
    %24 = tpu.concatenate %22, %23 in 0 : vector<4x256xf32>, vector<4x256xf32> -> vector<8x256xf32>
    %c0_6 = arith.constant 0 : index
    %c0_7 = arith.constant 0 : index
    %25 = vector.load %arg2[%c0_6, %c0_7] : memref<40x72xf32, #tpu.memory_space<vmem>>, vector<40x72xf32>
    %cst_8 = arith.constant 0.000000e+00 : f32
    %26 = vector.broadcast %cst_8 : f32 to vector<8x17xf32>
    %27 = tpu.concatenate %26, %24, %26 in 1 : vector<8x17xf32>, vector<8x256xf32>, vector<8x17xf32> -> vector<8x290xf32>
    %28 = vector.shape_cast %18 : vector<1x256xi1> to vector<1x256xi1>
    %29 = vector.broadcast %28 : vector<1x256xi1> to vector<8x256xi1>
    %30 = vector.shape_cast %20 : vector<1x256xi1> to vector<1x256xi1>
    %31 = vector.broadcast %30 : vector<1x256xi1> to vector<8x256xi1>
    %32 = vector.extract_strided_slice %27 {offsets = [0, 0], sizes = [8, 256], strides = [1, 1]} : vector<8x290xf32> to vector<8x256xf32>
    %cst_9 = arith.constant 0.000000e+00 : f32
    %33 = vector.broadcast %cst_9 : f32 to vector<8x256xf32>
    %34 = arith.select %29, %32, %33 : vector<8x256xi1>, vector<8x256xf32>
    %35 = vector.extract_strided_slice %27 {offsets = [0, 1], sizes = [8, 256], strides = [1, 1]} : vector<8x290xf32> to vector<8x256xf32>
    %36 = vector.extract_strided_slice %27 {offsets = [0, 2], sizes = [8, 256], strides = [1, 1]} : vector<8x290xf32> to vector<8x256xf32>
    %cst_10 = arith.constant 0.000000e+00 : f32
    %37 = vector.broadcast %cst_10 : f32 to vector<8x256xf32>
    %38 = arith.select %31, %36, %37 : vector<8x256xi1>, vector<8x256xf32>
    %39 = vector.extract_strided_slice %27 {offsets = [0, 16], sizes = [8, 256], strides = [1, 1]} : vector<8x290xf32> to vector<8x256xf32>
    %cst_11 = arith.constant 0.000000e+00 : f32
    %40 = vector.broadcast %cst_11 : f32 to vector<8x256xf32>
    %41 = arith.select %29, %39, %40 : vector<8x256xi1>, vector<8x256xf32>
    %42 = vector.extract_strided_slice %27 {offsets = [0, 17], sizes = [8, 256], strides = [1, 1]} : vector<8x290xf32> to vector<8x256xf32>
    %43 = vector.extract_strided_slice %27 {offsets = [0, 18], sizes = [8, 256], strides = [1, 1]} : vector<8x290xf32> to vector<8x256xf32>
    %cst_12 = arith.constant 0.000000e+00 : f32
    %44 = vector.broadcast %cst_12 : f32 to vector<8x256xf32>
    %45 = arith.select %31, %43, %44 : vector<8x256xi1>, vector<8x256xf32>
    %46 = vector.extract_strided_slice %27 {offsets = [0, 32], sizes = [8, 256], strides = [1, 1]} : vector<8x290xf32> to vector<8x256xf32>
    %cst_13 = arith.constant 0.000000e+00 : f32
    %47 = vector.broadcast %cst_13 : f32 to vector<8x256xf32>
    %48 = arith.select %29, %46, %47 : vector<8x256xi1>, vector<8x256xf32>
    %49 = vector.extract_strided_slice %27 {offsets = [0, 33], sizes = [8, 256], strides = [1, 1]} : vector<8x290xf32> to vector<8x256xf32>
    %50 = vector.extract_strided_slice %27 {offsets = [0, 34], sizes = [8, 256], strides = [1, 1]} : vector<8x290xf32> to vector<8x256xf32>
    %cst_14 = arith.constant 0.000000e+00 : f32
    %51 = vector.broadcast %cst_14 : f32 to vector<8x256xf32>
    %52 = arith.select %31, %50, %51 : vector<8x256xi1>, vector<8x256xf32>
    %53 = tpu.concatenate %34, %35, %38, %41, %42, %45, %48, %49, %52 in 0 : vector<8x256xf32>, vector<8x256xf32>, vector<8x256xf32>, vector<8x256xf32>, vector<8x256xf32>, vector<8x256xf32>, vector<8x256xf32>, vector<8x256xf32>, vector<8x256xf32> -> vector<72x256xf32>
    %cst_15 = arith.constant dense<0.000000e+00> : vector<40x256xf32>
    %54 = tpu.matmul %25, %53, %cst_15 {dimension_numbers = #tpu.dot_dimension_numbers<[1], [0], [0], [1], [0, 0, 1, 1], [], []>} : vector<40x72xf32>, vector<72x256xf32>, vector<40x256xf32> -> vector<40x256xf32>
    %55 = vector.extract_strided_slice %54 {offsets = [0, 0], sizes = [8, 256], strides = [1, 1]} : vector<40x256xf32> to vector<8x256xf32>
    %c0_16 = arith.constant 0 : index
    %c0_17 = arith.constant 0 : index
    %56 = vector.load %arg4[%c0_16, %c0_17] : memref<8x1xf32, #tpu.memory_space<vmem>>, vector<8x1xf32>
    %57 = vector.broadcast %56 : vector<8x1xf32> to vector<8x256xf32>
    %58 = arith.addf %55, %57 : vector<8x256xf32>
    %cst_18 = arith.constant 0.000000e+00 : f32
    %59 = vector.broadcast %cst_18 : f32 to vector<8x256xf32>
    %60 = arith.maximumf %58, %59 : vector<8x256xf32>
    %61 = vector.extract_strided_slice %54 {offsets = [8, 0], sizes = [32, 256], strides = [1, 1]} : vector<40x256xf32> to vector<32x256xf32>
    %c0_19 = arith.constant 0 : index
    %c0_20 = arith.constant 0 : index
    %62 = vector.load %arg3[%c0_19, %c0_20] : memref<32x72xf32, #tpu.memory_space<vmem>>, vector<32x72xf32>
    %cst_21 = arith.constant 0.000000e+00 : f32
    %63 = vector.broadcast %cst_21 : f32 to vector<8x17xf32>
    %64 = tpu.concatenate %63, %60, %63 in 1 : vector<8x17xf32>, vector<8x256xf32>, vector<8x17xf32> -> vector<8x290xf32>
    %65 = vector.shape_cast %18 : vector<1x256xi1> to vector<1x256xi1>
    %66 = vector.broadcast %65 : vector<1x256xi1> to vector<8x256xi1>
    %67 = vector.shape_cast %20 : vector<1x256xi1> to vector<1x256xi1>
    %68 = vector.broadcast %67 : vector<1x256xi1> to vector<8x256xi1>
    %69 = vector.extract_strided_slice %64 {offsets = [0, 0], sizes = [8, 256], strides = [1, 1]} : vector<8x290xf32> to vector<8x256xf32>
    %cst_22 = arith.constant 0.000000e+00 : f32
    %70 = vector.broadcast %cst_22 : f32 to vector<8x256xf32>
    %71 = arith.select %66, %69, %70 : vector<8x256xi1>, vector<8x256xf32>
    %72 = vector.extract_strided_slice %64 {offsets = [0, 1], sizes = [8, 256], strides = [1, 1]} : vector<8x290xf32> to vector<8x256xf32>
    %73 = vector.extract_strided_slice %64 {offsets = [0, 2], sizes = [8, 256], strides = [1, 1]} : vector<8x290xf32> to vector<8x256xf32>
    %cst_23 = arith.constant 0.000000e+00 : f32
    %74 = vector.broadcast %cst_23 : f32 to vector<8x256xf32>
    %75 = arith.select %68, %73, %74 : vector<8x256xi1>, vector<8x256xf32>
    %76 = vector.extract_strided_slice %64 {offsets = [0, 16], sizes = [8, 256], strides = [1, 1]} : vector<8x290xf32> to vector<8x256xf32>
    %cst_24 = arith.constant 0.000000e+00 : f32
    %77 = vector.broadcast %cst_24 : f32 to vector<8x256xf32>
    %78 = arith.select %66, %76, %77 : vector<8x256xi1>, vector<8x256xf32>
    %79 = vector.extract_strided_slice %64 {offsets = [0, 17], sizes = [8, 256], strides = [1, 1]} : vector<8x290xf32> to vector<8x256xf32>
    %80 = vector.extract_strided_slice %64 {offsets = [0, 18], sizes = [8, 256], strides = [1, 1]} : vector<8x290xf32> to vector<8x256xf32>
    %cst_25 = arith.constant 0.000000e+00 : f32
    %81 = vector.broadcast %cst_25 : f32 to vector<8x256xf32>
    %82 = arith.select %68, %80, %81 : vector<8x256xi1>, vector<8x256xf32>
    %83 = vector.extract_strided_slice %64 {offsets = [0, 32], sizes = [8, 256], strides = [1, 1]} : vector<8x290xf32> to vector<8x256xf32>
    %cst_26 = arith.constant 0.000000e+00 : f32
    %84 = vector.broadcast %cst_26 : f32 to vector<8x256xf32>
    %85 = arith.select %66, %83, %84 : vector<8x256xi1>, vector<8x256xf32>
    %86 = vector.extract_strided_slice %64 {offsets = [0, 33], sizes = [8, 256], strides = [1, 1]} : vector<8x290xf32> to vector<8x256xf32>
    %87 = vector.extract_strided_slice %64 {offsets = [0, 34], sizes = [8, 256], strides = [1, 1]} : vector<8x290xf32> to vector<8x256xf32>
    %cst_27 = arith.constant 0.000000e+00 : f32
    %88 = vector.broadcast %cst_27 : f32 to vector<8x256xf32>
    %89 = arith.select %68, %87, %88 : vector<8x256xi1>, vector<8x256xf32>
    %90 = tpu.concatenate %71, %72, %75, %78, %79, %82, %85, %86, %89 in 0 : vector<8x256xf32>, vector<8x256xf32>, vector<8x256xf32>, vector<8x256xf32>, vector<8x256xf32>, vector<8x256xf32>, vector<8x256xf32>, vector<8x256xf32>, vector<8x256xf32> -> vector<72x256xf32>
    %cst_28 = arith.constant dense<0.000000e+00> : vector<32x256xf32>
    %91 = tpu.matmul %62, %90, %cst_28 {dimension_numbers = #tpu.dot_dimension_numbers<[1], [0], [0], [1], [0, 0, 1, 1], [], []>} : vector<32x72xf32>, vector<72x256xf32>, vector<32x256xf32> -> vector<32x256xf32>
    %c0_29 = arith.constant 0 : index
    %c0_30 = arith.constant 0 : index
    %92 = vector.load %arg5[%c0_29, %c0_30] : memref<32x1xf32, #tpu.memory_space<vmem>>, vector<32x1xf32>
    %93 = vector.broadcast %92 : vector<32x1xf32> to vector<32x256xf32>
    %94 = arith.addf %91, %93 : vector<32x256xf32>
    %cst_31 = arith.constant 0.000000e+00 : f32
    %95 = vector.broadcast %cst_31 : f32 to vector<32x256xf32>
    %96 = arith.maximumf %94, %95 : vector<32x256xf32>
    %97 = arith.addf %96, %61 : vector<32x256xf32>
    %c0_32 = arith.constant 0 : index
    %c0_33 = arith.constant 0 : index
    %98 = vector.load %arg6[%c0_32, %c0_33] : memref<32x1xf32, #tpu.memory_space<vmem>>, vector<32x1xf32>
    %99 = vector.broadcast %98 : vector<32x1xf32> to vector<32x256xf32>
    %100 = arith.addf %97, %99 : vector<32x256xf32>
    %c0_34 = arith.constant 0 : index
    %c0_35 = arith.constant 0 : index
    %c0_36 = arith.constant 0 : index
    %101 = vector.load %arg7[%c0_34, %c0_35, %c0_36] : memref<1x32x256xf32, #tpu.memory_space<vmem>>, vector<1x32x256xf32>
    %102 = vector.shape_cast %101 : vector<1x32x256xf32> to vector<32x256xf32>
    %103 = vector.shape_cast %100 : vector<32x256xf32> to vector<1x32x256xf32>
    tpu.vector_store %arg7[%c0_34, %c0_35, %c0_36], %103 {strides = array<i32>} : memref<1x32x256xf32, #tpu.memory_space<vmem>>, vector<1x32x256xf32>,
    return
  }
  func.func @transform_0(%arg0: i32) -> (i32, i32, i32) {
    %c0_i32 = arith.constant 0 : i32
    %c0_i32_0 = arith.constant 0 : i32
    %c0_i32_1 = arith.constant 0 : i32
    return %arg0, %c0_i32, %c0_i32_0 : i32, i32, i32
  }
  func.func @transform_1(%arg0: i32) -> (i32, i32) {
    %c0_i32 = arith.constant 0 : i32
    %c0_i32_0 = arith.constant 0 : i32
    %c0_i32_1 = arith.constant 0 : i32
    return %c0_i32, %c0_i32_0 : i32, i32
  }
  func.func @transform_2(%arg0: i32) -> (i32, i32) {
    %c0_i32 = arith.constant 0 : i32
    %c0_i32_0 = arith.constant 0 : i32
    %c0_i32_1 = arith.constant 0 : i32
    return %c0_i32, %c0_i32_0 : i32, i32
  }
  func.func @transform_3(%arg0: i32) -> (i32, i32) {
    %c0_i32 = arith.constant 0 : i32
    %c0_i32_0 = arith.constant 0 : i32
    %c0_i32_1 = arith.constant 0 : i32
    return %c0_i32, %c0_i32_0 : i32, i32
  }
  func.func @transform_4(%arg0: i32) -> (i32, i32) {
    %c0_i32 = arith.constant 0 : i32
    %c0_i32_0 = arith.constant 0 : i32
    %c0_i32_1 = arith.constant 0 : i32
    return %c0_i32, %c0_i32_0 : i32, i32
  }
  func.func @transform_5(%arg0: i32) -> (i32, i32) {
    %c0_i32 = arith.constant 0 : i32
    %c0_i32_0 = arith.constant 0 : i32
    %c0_i32_1 = arith.constant 0 : i32
    return %c0_i32, %c0_i32_0 : i32, i32
  }
  func.func @transform_6(%arg0: i32) -> (i32, i32, i32) {
    %c0_i32 = arith.constant 0 : i32
    %c0_i32_0 = arith.constant 0 : i32
    %c0_i32_1 = arith.constant 0 : i32
    return %arg0, %c0_i32, %c0_i32_0 : i32, i32, i32
  }
}

</mosaic_0001>

<bundles_post_ra>
// kernel: _res_upsample_pallas.1
= control target key start
LH: loop header
LB: loop body
LE: loop exit
PB: predicated region body
PF: predicated region fallthrough
CT: control target
= control target key end

     0   :  { %11 = vsyncpa [#allocation3], 0  ;;  %s1774_s0 = inlined_call_operand.hbm [shape: f32[2,4,256], index: 0, kind: input, shape index: {}]   ;;  %s1775_s1 = inlined_call_operand.vmem [shape: f32[40,72], index: 1, kind: input, shape index: {}]   ;;  %s1776_s2 = inlined_call_operand.vmem [shape: f32[32,72], index: 2, kind: input, shape index: {}]   ;;  %s1777_s3 = inlined_call_operand.vmem [shape: f32[8,1], index: 3, kind: input, shape index: {}]   ;;  %s1778_s4 = inlined_call_operand.vmem [shape: f32[32,1], index: 4, kind: input, shape index: {}]   ;;  %s1779_s5 = inlined_call_operand.vmem [shape: f32[32,1], index: 5, kind: input, shape index: {}]   ;;  %s1780_s6 = inlined_call_operand.hbm [shape: f32[2,32,256], index: 6, kind: output, shape index: {}]  }
   0x1   :  { %13 = vsyncpa [#allocation3 + $0x1], 0 }
   0x2   :  { %14 = vsyncpa [#allocation4], 0 }
   0x3   :  { %16 = vsyncpa [#allocation4 + $0x1], 0  ;;  %s1312_s21 = smov 0   ;;  %s1314_s22 = smov 0  }
   0x4   :  { %s1316_s23 = smov 0   ;;  %s1318_s24 = smov 0  }
   0x5 LB: > { %s1333_s25 = sadd.s32 4294967295, %s1259_s24   ;;  %s933_s26 = sadd.s32 4294967294, %s1259_s24   ;;  %s1259_s24 = sphi %s1318_s24, %s1827_s24   ;;  %s1255_s23 = sphi %s1316_s23, %s1826_s23   ;;  %s1251_s22 = sphi %s1314_s22, %s1825_s22   ;;  %s1247_s21 = sphi %s1312_s21, %s1824_s21  }
   0x6   : > { %s1337_s27 = sadd.s32 1, %s1259_s24   ;;  %s29_s28 = sadd.s32 1, %s1255_s23 }
   0x7   : > { %s26_s29 = ssub.s32 %s1259_s24, %s1337_s27  ;;  %p36_p0 = scmp.ne.s32.totalorder %s1255_s23, %s1251_s22 }
   0x8   : > { %p27_p1 = scmp.eq.s32.totalorder %s26_s29, 0  ;;  %p37_p2 = scmp.eq.s32.totalorder %s1259_s24, 0 }
   0x9   : > { %p42_p3 = scmp.ne.s32.totalorder %s1251_s22, %s1247_s21  ;;  %p43_p4 = scmp.eq.s32.totalorder %s1333_s25, 0 }
   0xa   : > { %s1349_s30 = scalar_select %p27_p1, %s1255_s23, %s29_s28  }
   0xb   : > { %p1351_p5 = por %p37_p2, %p36_p0  ;;  %p1355_p6 = por %p43_p4, %p42_p3 }
   0xc   : > { %p171_p7 = scmp.eq.s32.totalorder %s1333_s25, 1  ;;  %p177_p8 = scmp.eq.s32.totalorder %s933_s26, 1 }
   0xd   : > { %p1042_p10 = scmp.lt.s32.totalorder %s1259_s24, 2  ;;  %s212_s11 = sand.u32 1, %s1255_s23  }
   0xe   : > { %p1362_p11 = por %p171_p7, %p36_p0  ;;  %p1366_p12 = por %p177_p8, %p42_p3 }
   0xf   : > { %s980_s12 = sshll.u32 %s1259_s24, 7  ;;  %s936_s13 = sshll.u32 %s212_s11, 3 }
  0x10   : > { %s1789_s9 = scalar_select %p1362_p11, 1, 0 }
  0x11   : > { %s1790_s10 = scalar_select %p1366_p12, 1, 0 }
  0x12   : > { %s1375_s16 = scalar_lea.hbm %s1774_s0, %s980_s12  ;;  %s216_s17 = scalar_lea.vmem [#allocation2], %s936_s13 }
  0x13   : > { %s224_s18 = sshll.u32 %s216_s17, 4  ;;  %p1379_p13 = pnand %p1042_p10, %p1351_p5  ;;  %s1383_s18 = int_to_ptr.vmem [resolvable:$true] %s224_s18 }
  0x14   : > { %s213_s20 = scalar_lea.sflag [#allocation3], %s212_s11  ;;  %s1163_s26 = scalar_lea.hbm %s1375_s16, 128 }
  0x15   : > { %p1164_p2 = scmp.ne.s32.totalorder %s1375_s16, %s1163_s26  ;;  %p1165_p3 = pneg %p1379_p13 }
  0x16   : > { %s1168_s7 = scalar_lea.hbm %s1774_s0, 256  ;;  %p1169_p5 = scmp.lt.u32.totalorder %s1375_s16, %s1774_s0 }
  0x17   : > { %p1166_p4 = pnand %p1165_p3, %p1164_p2  ;;  %p1170_p8 = scmp.lt.u32.totalorder %s1168_s7, %s1163_s26 }
  0x18   : > { %p1172_p9 = scmp.lt.u32.totalorder %s1163_s26, %s1375_s16 }
  0x19   : > { %p1167_p7 = pneg %p1166_p4  ;;  %p1171_p10 = por %p1170_p8, %p1169_p5 }
  0x1b   : > { %p1173_p0 = por %p1172_p9, %p1171_p10 }
  0x1d   : > { %p1174_p1 = pnand %p1173_p0, %p1167_p7 }
  0x1f   : > { %1177 = shalt.err (!%p1174_p1)
}
  0x20   : > { %s1178_s11 = scalar_lea.vmem %s1383_s18, 128  ;;  %s1261_s14 = smov [#allocation2]  }
  0x21   : > { %p1179_p2 = scmp.ne.s32.totalorder %s1383_s18, %s1178_s11  ;;  %s1183_s15 = sshll.u32 %s1261_s14, 4  ;;  %s1184_s15 = int_to_ptr.vmem [resolvable:$false] %s1183_s15 }
  0x22   : > { %s1185_s17 = scalar_lea.vmem %s1184_s15, 256  ;;  %p1186_p11 = scmp.lt.s32.totalorder %s1383_s18, %s1184_s15 }
  0x23   : > { %p1181_p4 = pnand %p1179_p2, %p1165_p3  ;;  %p1187_p5 = scmp.lt.s32.totalorder %s1185_s17, %s1178_s11 }
  0x25   : > { %p1182_p12 = pneg %p1181_p4  ;;  %p1188_p8 = por %p1187_p5, %p1186_p11 }
  0x27   : > { %p1189_p9 = pnand %p1188_p8, %p1182_p12 }
  0x29   : > { %1192 = shalt.err (!%p1189_p9)
}
  0x2a   : > { %1037 = dma.hbm_to_vmem [thread:$0]  (!%p1379_p13), %s1375_s16, 128, %s1383_s18, %s213_s20  }
  0x2b   : > { %p1792_p0 = scmp.lt.s32.totalorder %s1259_s24, 3  ;;  %p1793_p1 = scmp.ge.s32.totalorder %s1259_s24, 1 }
  0x2d   : > { %p230_p3 = pnand %p1793_p1, %p1792_p0 }
  0x2e   : > { %s1417_s26 = sand.u32 (!%p230_p3), 1, %s1251_s22  }
  0x2f   : > { %233 = sbr.rel (%p230_p3) target bundleno = 1054 (0x41e), region = 44  ;;  %s940_s28 = sshll.u32 (!%p230_p3), %s1417_s26, 3 }
  0x30   : > { %s236_s29 = scalar_lea.sflag (!%p230_p3), [#allocation3], %s1417_s26  ;;  %s239_s7 = scalar_lea.vmem (!%p230_p3), [#allocation2], %s940_s28 }
  0x36   : > { %1238 = dma.done.wait (%p1355_p6), %s236_s29, 128  }
  0x37   : > { %1240 = vsyncadd (%p1355_p6), %s236_s29, 4294967168  ;;  %vm303_vm0 = vcmask 1043456   ;;  %v299_v0 = vld [vmem:[%s239_s7] sm:$0xff]  ;;  %s1262_s16 = smov 17   ;;  %vm317_vm1 = vcmask 138240   ;;  %s1263_s18 = smov 127   ;;  %v268_v13 = vlaneseq }
  0x38   : > { %v304_v1 = vsel %vm303_vm0, %v299_v0, 0.0  ;;  %v301_v2 = vcombine.high %v299_v0, %v299_v0  ;;  %s1264_s8 = smov 126   ;;  %s1265_s19 = smov 112   ;;  %v1269_v10 = vmov 0.0   ;;  %v1272_v11 = vmov 0   ;;  %v545_v12 = vld [vmem:[%s1777_s3] sm:$0xff] }
  0x39   : > { %313 = vrot.lane.b32.xlu0 %v304_v1, %s1262_s16  ;;  %s1266_s20 = smov 110   ;;  %s1267_s12 = smov 111   ;;  %514 = vmatprep.mubr.f32.mxu0 %v1269_v10  ;;  %v269_v16 = vand.u32 127, %v268_v13  ;;  %vm407_vm3 = vcmask 1039360   ;;  %vm342_vm5 = vcmask 1031168   ;;  %vm1273_vm6 = vmmov 1  }
  0x3a   : > { %v305_v3 = vsel %vm303_vm0, %v301_v2, 0.0  ;;  %s1268_s13 = smov 96   ;;  %765 = vmatprep.mubr.f32.mxu1 %v1269_v10  ;;  %s1270_s11 = smov 94   ;;  %1125 = vset.pattern.permute.xlu1 %v1272_v11  ;;  %vm355_vm8 = vcmask 916480   ;;  %vm1782_vm12 = vcmask 900096   ;;  %vm1784_vm14 = vcmask 908288  }
  0x3b   : > { %s1271_s14 = smov 95   ;;  %1161 = vset.pattern.permute.xlu0 %v1272_v11  ;;  %v270_v19 = vadd.s32 128, %v269_v16  ;;  %v275_v23 = vand.u32 15, %v269_v16  ;;  %v555_v2 = vld [vmem:[%s1776_s2] sm:$0xff]  ;;  %v556_v33 = vld [vmem:[%s1776_s2 + $0x8] sm:$0xff]  ;;  %v557_v39 = vld [vmem:[%s1776_s2 + $0x10] sm:$0xff] }
  0x3c   : > { %v558_v40 = vld [vmem:[%s1776_s2 + $0x18] sm:$0xff]  ;;  %p1821_p11 = scmp.ne.s32.totalorder %s1789_s9, 0  ;;  %s1274_s29 = smov [#allocation5]  }
  0x3d   : > { %315 = vrot.lane.b32.xlu0 %v305_v3, %s1262_s16  ;;  %v282_v22 = vand.u32 15, %v270_v19  ;;  %vm1472_vm4 = vcmp.ge.s32.totalorder %v275_v23, 1  ;;  %vm1498_vm11 = vcmp.le.s32.totalorder %v275_v23, 14  ;;  %s1197_s7 = sshll.u32 %s1274_s29, 4  ;;  %s1198_s7 = int_to_ptr.vmem [resolvable:$false] %s1197_s7 }
  0x3e   : > { %vm1490_vm9 = vmpackc.low %vm1273_vm6, %vm1472_vm4 }
  0x3f   : > { %vm1468_vm2 = vcmp.ge.s32.totalorder %v282_v22, 1  ;;  %vm1494_vm10 = vcmp.le.s32.totalorder %v282_v22, 14  ;;  %vm992_vm15 = vmpackc.low %vm1472_vm4, %vm1498_vm11  ;;  %vm1817_vm4 = vcmask 588800  }
  0x40   : > { %vm1480_vm7 = vmpackc.low %vm1273_vm6, %vm1468_vm2 }
  0x41   : > { %vm1783_vm13 = vmpackc.low %vm1468_vm2, %vm1494_vm10 }
  0x42   : > { %vm1535_vm0 = vmpackc.low %vm1494_vm10, %vm1273_vm6 }
  0xab   : > { %v314_v4 = vpop.permute.xlu0 %313 }
  0xac   : > { %v1428_v5 = vsel %vm317_vm1, 0.0, %v314_v4 }
  0xad   : > { %401 = vrot.lane.b32.xlu1 %v1428_v5, %s1263_s18  ;;  %336 = vrot.lane.b32.xlu0 %v1428_v5, %s1264_s8 }
  0xaf   : > { %v316_v6 = vpop.permute.xlu0 %315 }
  0xb0   : > { %v1439_v7 = vsel %vm317_vm1, %v314_v4, %v316_v6  ;;  %v323_v8 = vsel %vm317_vm1, %v316_v6, 0.0 }
  0xb1   : > { %349 = vrot.lane.b32.xlu1 %v1428_v5, %s1265_s19  ;;  %362 = vrot.lane.b32.xlu0 %v1428_v5, %s1266_s20  ;;  %v1095_v9 = vpack.i.bf16 %v323_v8, %v1439_v7 }
  0xb5   : > { %412 = vrot.lane.b32.xlu1 %v1428_v5, %s1267_s12  ;;  %375 = vrot.lane.b32.xlu0 %v1428_v5, %s1268_s13 }
  0xb9   : > { %1096 = vrot.lane.b32.xlu0 %v1095_v9, %s1264_s8  ;;  %1091 = vrot.lane.b32.xlu1 %v1095_v9, %s1263_s18 }
  0xbd   : > { %1106 = vrot.lane.b32.xlu0 %v1095_v9, %s1266_s20  ;;  %1101 = vrot.lane.b32.xlu1 %v1095_v9, %s1265_s19 }
  0xc1   : > { %1116 = vrot.lane.b32.xlu0 %v1095_v9, %s1268_s13  ;;  %1111 = vrot.lane.b32.xlu1 %v1095_v9, %s1267_s12 }
  0xc5   : > { %390 = vrot.lane.b32.xlu0 %v1439_v7, %s1270_s11  ;;  %1121 = vrot.lane.b32.xlu1 %v1095_v9, %s1271_s14 }
  0xc9   : > { %388 = vrot.lane.b32.xlu0 %v1428_v5, %s1270_s11  ;;  %423 = vrot.lane.b32.xlu1 %v1428_v5, %s1271_s14 }
  0xcd   : > { %392 = vrot.lane.b32.xlu1 %v323_v8, %s1270_s11 }
  0xd1   : > { %548 = vperm.xlu1 %1125, %v545_v12  }
 0x11f   : > { %v402_v14 = vpop.permute.xlu1 %401  ;;  %v337_v15 = vpop.permute.xlu0 %336 }
 0x123   : > { %v350_v17 = vpop.permute.xlu1 %349  ;;  %v363_v18 = vpop.permute.xlu0 %362 }
 0x127   : > { %v413_v20 = vpop.permute.xlu1 %412  ;;  %v1466_v21 = vpop.permute.xlu0 %375 }
 0x12b   : > { %v1092_v24 = vpop.permute.xlu1 %1091  ;;  %v1097_v25 = vpop.permute.xlu0 %1096 }
 0x12c   : > { %v1094_v27 = vunpack.i.h.bf16 %v1092_v24  ;;  %v1093_v28 = vunpack.i.l.bf16 %v1092_v24  ;;  %v1099_v30 = vunpack.i.h.bf16 %v1097_v25  ;;  %v1098_v31 = vunpack.i.l.bf16 %v1097_v25 }
 0x12e   : > { %v409_v32 = vsel %vm407_vm3, %v1093_v28, %v1094_v27  ;;  %v408_v34 = vsel %vm407_vm3, %v402_v14, %v1093_v28  ;;  %v343_v46 = vsel %vm342_vm5, %v337_v15, %v1098_v31  ;;  %v344_v47 = vsel %vm342_vm5, %v1098_v31, %v1099_v30 }
 0x12f   : > { %v1102_v35 = vpop.permute.xlu1 %1101  ;;  %v1107_v36 = vpop.permute.xlu0 %1106  ;;  %v982_v37 = vpack.c.bf16 %v409_v32, %v1439_v7  ;;  %v985_v38 = vpack.c.bf16 %v408_v34, %v1428_v5 }
 0x130   : > { %v1104_v41 = vunpack.i.h.bf16 %v1102_v35  ;;  %v1103_v42 = vunpack.i.l.bf16 %v1102_v35  ;;  %v1109_v44 = vunpack.i.h.bf16 %v1107_v36  ;;  %v1108_v45 = vunpack.i.l.bf16 %v1107_v36  ;;  %v307_v35 = vld [vmem:[%s1775_s1 + $0x8] sm:$0xff]  ;;  %v308_v36 = vld [vmem:[%s1775_s1 + $0x10] sm:$0xff] }
 0x131   : > { %984 = vmatprep.subr.msk.bf16.mxu0 %vm1480_vm7, %v982_v37  ;;  %v665_v37 = vld [vmem:[%s1778_s4] sm:$0xff] }
 0x132   : > { %v356_v48 = vsel %vm355_vm8, %v350_v17, %v1103_v42  ;;  %v357_v49 = vsel %vm355_vm8, %v1103_v42, %v1104_v41  ;;  %987 = vmatpush1.bf16.msk.msra.mxu0 %vm1490_vm9, %v985_v38  ;;  %v369_v56 = vsel %vm1782_vm12, %v363_v18, %v1108_v45  ;;  %v370_v57 = vsel %vm1782_vm12, %v1108_v45, %v1109_v44  ;;  %v306_v17 = vld [vmem:[%s1775_s1] sm:$0xff]  ;;  %v309_v38 = vld [vmem:[%s1775_s1 + $0x18] sm:$0xff]  ;;  %v667_v41 = vld [vmem:[%s1778_s4 + $0x10] sm:$0xff] }
 0x133   : > { %v988_v50 = vpack.c.bf16 %v357_v49, %v344_v47  ;;  %v991_v51 = vpack.c.bf16 %v356_v48, %v343_v46  ;;  %v1112_v52 = vpop.permute.xlu1 %1111  ;;  %v1117_v53 = vpop.permute.xlu0 %1116  ;;  %vm1785_vm12 = vcmask 785408   ;;  %v310_v42 = vld [vmem:[%s1775_s1 + $0x20] sm:$0xff]  ;;  %v668_v44 = vld [vmem:[%s1778_s4 + $0x18] sm:$0xff]  ;;  %v807_v45 = vld [vmem:[%s1779_s5 + $0x8] sm:$0xff] }
 0x134   : > { %v1114_v54 = vunpack.i.h.bf16 %v1112_v52  ;;  %v1113_v55 = vunpack.i.l.bf16 %v1112_v52  ;;  %v1119_v60 = vunpack.i.h.bf16 %v1117_v53  ;;  %v1118_v61 = vunpack.i.l.bf16 %v1117_v53  ;;  %v809_v46 = vld [vmem:[%s1779_s5 + $0x18] sm:$0xff]  ;;  %v666_v47 = vld [vmem:[%s1778_s4 + $0x8] sm:$0xff]  ;;  %v806_v48 = vld [vmem:[%s1779_s5] sm:$0xff] }
 0x135   : > { %990 = vmatprep.subr.msk.bf16.mxu0 %vm1783_vm13, %v988_v50  ;;  %vm1542_vm13 = vmpackc.low %vm1498_vm11, %vm1273_vm6  ;;  %vm394_vm6 = vcmask 769024   ;;  %v808_v49 = vld [vmem:[%s1779_s5 + $0x10] sm:$0xff] }
 0x136   : > { %v419_v58 = vsel %vm1784_vm14, %v413_v20, %v1113_v55  ;;  %v420_v59 = vsel %vm1784_vm14, %v1113_v55, %v1114_v54  ;;  %993 = vmatpush1.bf16.msk.msra.mxu0 %vm992_vm15, %v991_v51  ;;  %vm429_vm14 = vcmask 777216   ;;  %v383_v6 = vsel %vm1785_vm12, %v1118_v61, %v1119_v60 }
 0x137   : > { %v994_v63 = vpack.c.bf16 %v370_v57, %v420_v59  ;;  %v997_v0 = vpack.c.bf16 %v369_v56, %v419_v58  ;;  %v1122_v1 = vpop.permute.xlu1 %1121  ;;  %v391_v5 = vpop.permute.xlu0 %390  ;;  %v382_v11 = vsel %vm1785_vm12, %v1466_v21, %v1118_v61  ;;  %vm1786_vm12 = vcmask 588800  }
 0x138   : > { %v1124_v3 = vunpack.i.h.bf16 %v1122_v1  ;;  %v1123_v4 = vunpack.i.l.bf16 %v1122_v1 }
 0x139   : > { %996 = vmatprep.subr.msk.bf16.mxu0 %vm1535_vm0, %v994_v63 }
 0x13a   : > { %999 = vmatpush1.bf16.msk.msra.mxu0 %vm1542_vm13, %v997_v0  ;;  %v431_v7 = vsel %vm429_vm14, %v1123_v4, %v1124_v3 }
 0x13b   : > { %v424_v8 = vpop.permute.xlu1 %423  ;;  %v1000_v9 = vpack.c.bf16 %v431_v7, %v383_v6  ;;  %v389_v14 = vpop.permute.xlu0 %388 }
 0x13c   : > { %v430_v12 = vsel %vm429_vm14, %v424_v8, %v1123_v4  ;;  %v395_v18 = vsel %vm394_vm6, %v389_v14, %v391_v5 }
 0x13d   : > { %v1003_v13 = vpack.c.bf16 %v430_v12, %v382_v11  ;;  %1002 = vmatprep.subr.msk.bf16.mxu0 %vm1480_vm7, %v1000_v9 }
 0x13f   : > { %v393_v15 = vpop.permute.xlu1 %392  ;;  %1005 = vmatpush1.bf16.msk.msra.mxu0 %vm1490_vm9, %v1003_v13 }
 0x140   : > { %v396_v16 = vsel %vm394_vm6, %v391_v5, %v393_v15 }
 0x141   : > { %952 = vmatprep.subr.msk.mxu0 %vm1494_vm10, %v396_v16 }
 0x143   : > { %953 = vmatpush1.msk.msra.mxu0 %vm1498_vm11, %v395_v18 }
 0x144   : > { %954 = vmatmul.mubr.msk.f32.vlgmr.msra.gmra.mrb[0].mxu0 %vm1786_vm12, %v306_v17 }
 0x145   : > { %520 = vmatprep.mubr.f32.mxu0 %v1269_v10 }
 0x148   : > { %955 = vmatmul.mubr.msk.f32.gmra.mrb[2].mxu0 %vm1786_vm12, %v307_v35 }
 0x149   : > { %526 = vmatprep.mubr.f32.mxu0 %v1269_v10 }
 0x14c   : > { %956 = vmatmul.mubr.msk.f32.gmra.mrb[4].mxu0 %vm1786_vm12, %v308_v36 }
 0x14d   : > { %532 = vmatprep.mubr.f32.mxu0 %v1269_v10 }
 0x150   : > { %v549_v19 = vpop.permute.xlu1 %548  ;;  %957 = vmatmul.mubr.msk.f32.gmra.mrb[6].mxu0 %vm1786_vm12, %v309_v38 }
 0x151   : > { %538 = vmatprep.mubr.f32.mxu0 %v1269_v10 }
 0x154   : > { %958 = vmatmul.mubr.msk.f32.gmra.mrb[8].mxu0 %vm1786_vm12, %v310_v42 }
 0x217   : > { %v516_v20 = vpop.f32.mrb[0].mxu0 }
 0x218   : > { %v551_v21 = vadd.f32 %v549_v19, %v516_v20  ;;  %v518_v22 = vpop.f32.mrb[1].mxu0 }
 0x219   : > { %v552_v23 = vadd.f32 %v549_v19, %v518_v22 }
 0x21a   : > { %v553_v24 = vmax.f32 %v551_v21, 0.0 }
 0x21b   : > { %v554_v25 = vmax.f32 %v552_v23, 0.0  ;;  %v522_v43 = vpop.f32.mrb[2].mxu0 }
 0x21c   : > { %561 = vrot.lane.b32.xlu0 %v553_v24, %s1262_s16 }
 0x21d   : > { %563 = vrot.lane.b32.xlu1 %v554_v25, %s1262_s16 }
 0x28e   : > { %v562_v27 = vpop.permute.xlu0 %561 }
 0x28f   : > { %v1573_v28 = vsel %vm317_vm1, 0.0, %v562_v27  ;;  %v564_v30 = vpop.permute.xlu1 %563 }
 0x290   : > { %575 = vrot.lane.b32.xlu0 %v1573_v28, %s1264_s8  ;;  %635 = vrot.lane.b32.xlu1 %v1573_v28, %s1263_s18  ;;  %v1584_v31 = vsel %vm317_vm1, %v562_v27, %v564_v30  ;;  %v570_v32 = vsel %vm317_vm1, %v564_v30, 0.0  ;;  %vm1810_vm1 = vcmask 908288  }
 0x291   : > { %v1136_v34 = vpack.i.bf16 %v570_v32, %v1584_v31 }
 0x294   : > { %599 = vrot.lane.b32.xlu0 %v1573_v28, %s1266_s20  ;;  %587 = vrot.lane.b32.xlu1 %v1573_v28, %s1265_s19 }
 0x298   : > { %611 = vrot.lane.b32.xlu0 %v1573_v28, %s1268_s13  ;;  %645 = vrot.lane.b32.xlu1 %v1573_v28, %s1267_s12 }
 0x29c   : > { %1137 = vrot.lane.b32.xlu1 %v1136_v34, %s1265_s19  ;;  %1127 = vrot.lane.b32.xlu0 %v1136_v34, %s1263_s18 }
 0x2a0   : > { %1147 = vrot.lane.b32.xlu1 %v1136_v34, %s1267_s12  ;;  %1132 = vrot.lane.b32.xlu0 %v1136_v34, %s1264_s8  ;;  %s941_s8 = sshll.u32 %s1417_s26, 6 }
 0x2a4   : > { %1157 = vrot.lane.b32.xlu1 %v1136_v34, %s1271_s14  ;;  %1142 = vrot.lane.b32.xlu0 %v1136_v34, %s1266_s20  ;;  %s1713_s20 = scalar_lea.vmem [#allocation5], %s941_s8 }
 0x2a5   : > { %s860_s12 = sshll.u32 %s1713_s20, 4  ;;  %s1722_s12 = int_to_ptr.vmem [resolvable:$true] %s860_s12 }
 0x2a6   : > { %s1193_s28 = scalar_lea.vmem %s1722_s12, 1024  ;;  %p1200_p7 = scmp.lt.s32.totalorder %s1722_s12, %s1198_s7 }
 0x2a7   : > { %p1194_p6 = scmp.ne.s32.totalorder %s1722_s12, %s1193_s28 }
 0x2a8   : > { %655 = vrot.lane.b32.xlu1 %v1573_v28, %s1271_s14  ;;  %1152 = vrot.lane.b32.xlu0 %v1136_v34, %s1268_s13  ;;  %s981_s13 = sshll.u32 %s1333_s25, 10  ;;  %s847_s25 = scalar_lea.sflag [#allocation4], %s1417_s26 }
 0x2a9   : > { %s1728_s17 = scalar_lea.hbm %s1780_s6, %s981_s13  ;;  %p1195_p12 = pnand %p1194_p6, %p1821_p11 }
 0x2ab   : > { %p1196_p13 = pneg %p1195_p12 }
 0x2ac   : > { %627 = vrot.lane.b32.xlu1 %v570_v32, %s1270_s11  ;;  %625 = vrot.lane.b32.xlu0 %v1584_v31, %s1270_s11 }
 0x2b0   : > { %671 = vperm.xlu1 %1125, %v665_v37   ;;  %623 = vrot.lane.b32.xlu0 %v1573_v28, %s1270_s11  ;;  %s1199_s11 = scalar_lea.vmem %s1198_s7, 2048 }
 0x2b1   : > { %p1201_p10 = scmp.lt.s32.totalorder %s1199_s11, %s1193_s28 }
 0x2b3   : > { %p1202_p2 = por %p1201_p10, %p1200_p7 }
 0x2b4   : > { %681 = vperm.xlu1 %1125, %v667_v41   ;;  %676 = vperm.xlu0 %1161, %v666_v47   ;;  %v524_v47 = vpop.f32.mrb[3].mxu0 }
 0x2b5   : > { %p1203_p4 = pnand %p1202_p2, %p1196_p13 }
 0x2b8   : > { %686 = vperm.xlu1 %1125, %v668_v44   ;;  %812 = vperm.xlu0 %1161, %v806_v48   ;;  %v528_v48 = vpop.f32.mrb[4].mxu0 }
 0x2bc   : > { %817 = vperm.xlu1 %1125, %v807_v45   ;;  %822 = vperm.xlu0 %1161, %v808_v49   ;;  %v530_v49 = vpop.f32.mrb[5].mxu0 }
 0x2c0   : > { %827 = vperm.xlu1 %1125, %v809_v46  }
 0x302   : > { %v576_v50 = vpop.permute.xlu0 %575  ;;  %v636_v51 = vpop.permute.xlu1 %635 }
 0x306   : > { %v600_v52 = vpop.permute.xlu0 %599  ;;  %v588_v53 = vpop.permute.xlu1 %587 }
 0x30a   : > { %v612_v54 = vpop.permute.xlu0 %611  ;;  %v646_v55 = vpop.permute.xlu1 %645 }
 0x30e   : > { %v1128_v56 = vpop.permute.xlu0 %1127  ;;  %v1138_v57 = vpop.permute.xlu1 %1137 }
 0x30f   : > { %v1130_v58 = vunpack.i.h.bf16 %v1128_v56  ;;  %v1129_v59 = vunpack.i.l.bf16 %v1128_v56  ;;  %v1140_v60 = vunpack.i.h.bf16 %v1138_v57  ;;  %v1139_v61 = vunpack.i.l.bf16 %v1138_v57 }
 0x311   : > { %v642_v63 = vsel %vm407_vm3, %v1129_v59, %v1130_v58  ;;  %v641_v0 = vsel %vm407_vm3, %v636_v51, %v1129_v59  ;;  %v593_v11 = vsel %vm355_vm8, %v588_v53, %v1139_v61  ;;  %v594_v12 = vsel %vm355_vm8, %v1139_v61, %v1140_v60  ;;  %vm1811_vm3 = vmmov %vm1810_vm1 }
 0x312   : > { %v1133_v1 = vpop.permute.xlu0 %1132  ;;  %v1148_v3 = vpop.permute.xlu1 %1147  ;;  %v1006_v4 = vpack.c.bf16 %v642_v63, %v1584_v31  ;;  %v1009_v5 = vpack.c.bf16 %v641_v0, %v1573_v28  ;;  %vm1812_vm8 = vmpackc.low %vm1468_vm2, %vm1494_vm10  ;;  %vm1815_vm2 = vcmask 785408  }
 0x313   : > { %v1135_v6 = vunpack.i.h.bf16 %v1133_v1  ;;  %v1134_v7 = vunpack.i.l.bf16 %v1133_v1  ;;  %v1150_v8 = vunpack.i.h.bf16 %v1148_v3  ;;  %v1149_v9 = vunpack.i.l.bf16 %v1148_v3 }
 0x314   : > { %1008 = vmatprep.subr.msk.bf16.mxu1 %vm1480_vm7, %v1006_v4 }
 0x315   : > { %v581_v13 = vsel %vm342_vm5, %v576_v50, %v1134_v7  ;;  %v582_v14 = vsel %vm342_vm5, %v1134_v7, %v1135_v6  ;;  %1011 = vmatpush1.bf16.msk.msra.mxu1 %vm1490_vm9, %v1009_v5  ;;  %v651_v21 = vsel %vm1810_vm1, %v646_v55, %v1149_v9  ;;  %v652_v22 = vsel %vm1811_vm3, %v1149_v9, %v1150_v8  ;;  %v534_v50 = vpop.f32.mrb[6].mxu0 }
 0x316   : > { %v1012_v15 = vpack.c.bf16 %v594_v12, %v582_v14  ;;  %v1015_v16 = vpack.c.bf16 %v593_v11, %v581_v13  ;;  %v1143_v17 = vpop.permute.xlu0 %1142  ;;  %v1158_v18 = vpop.permute.xlu1 %1157  ;;  %vm1813_vm5 = vcmask 900096  }
 0x317   : > { %v1145_v19 = vunpack.i.h.bf16 %v1143_v17  ;;  %v1144_v20 = vunpack.i.l.bf16 %v1143_v17  ;;  %vm1814_vm12 = vmmov %vm1813_vm5  ;;  %v1160_v25 = vunpack.i.h.bf16 %v1158_v18  ;;  %v1159_v27 = vunpack.i.l.bf16 %v1158_v18  ;;  %v536_v51 = vpop.f32.mrb[7].mxu0 }
 0x318   : > { %1014 = vmatprep.subr.msk.bf16.mxu1 %vm1812_vm8, %v1012_v15 }
 0x319   : > { %v605_v23 = vsel %vm1813_vm5, %v600_v52, %v1144_v20  ;;  %v606_v24 = vsel %vm1814_vm12, %v1144_v20, %v1145_v19  ;;  %1017 = vmatpush1.bf16.msk.msra.mxu1 %vm992_vm15, %v1015_v16  ;;  %v662_v35 = vsel %vm429_vm14, %v1159_v27, %v1160_v25  ;;  %vm1816_vm12 = vmmov %vm1815_vm2  ;;  %v540_v52 = vpop.f32.mrb[8].mxu0 }
 0x31a   : > { %v1018_v28 = vpack.c.bf16 %v606_v24, %v652_v22  ;;  %v1021_v30 = vpack.c.bf16 %v605_v23, %v651_v21  ;;  %v1153_v31 = vpop.permute.xlu0 %1152  ;;  %v656_v26 = vpop.permute.xlu1 %655 }
 0x31b   : > { %v1155_v32 = vunpack.i.h.bf16 %v1153_v31  ;;  %v1154_v34 = vunpack.i.l.bf16 %v1153_v31  ;;  %v661_v29 = vsel %vm429_vm14, %v656_v26, %v1159_v27  ;;  %v542_v53 = vpop.f32.mrb[9].mxu0 }
 0x31c   : > { %1020 = vmatprep.subr.msk.bf16.mxu1 %vm1535_vm0, %v1018_v28 }
 0x31d   : > { %v618_v36 = vsel %vm1815_vm2, %v1154_v34, %v1155_v32  ;;  %v617_v37 = vsel %vm1816_vm12, %v612_v54, %v1154_v34  ;;  %1023 = vmatpush1.bf16.msk.msra.mxu1 %vm1542_vm13, %v1021_v30 }
 0x31e   : > { %v1024_v38 = vpack.c.bf16 %v662_v35, %v618_v36  ;;  %v1027_v41 = vpack.c.bf16 %v661_v29, %v617_v37  ;;  %v626_v42 = vpop.permute.xlu0 %625  ;;  %v628_v44 = vpop.permute.xlu1 %627 }
 0x31f   : > { %v630_v62 = vsel %vm394_vm6, %v626_v42, %v628_v44 }
 0x320   : > { %1026 = vmatprep.subr.msk.bf16.mxu1 %vm1480_vm7, %v1024_v38  ;;  %vm1818_vm7 = vmmov %vm1817_vm4 }
 0x321   : > { %1029 = vmatpush1.bf16.msk.msra.mxu1 %vm1490_vm9, %v1027_v41  ;;  %vm1819_vm9 = vmmov %vm1817_vm4 }
 0x322   : > { %v624_v45 = vpop.permute.xlu0 %623  ;;  %969 = vmatprep.subr.msk.mxu1 %vm1494_vm10, %v630_v62  ;;  %vm1820_vm10 = vmmov %vm1817_vm4 }
 0x323   : > { %v629_v46 = vsel %vm394_vm6, %v624_v45, %v626_v42 }
 0x325   : > { %970 = vmatpush1.msk.msra.mxu1 %vm1498_vm11, %v629_v46 }
 0x326   : > { %971 = vmatmul.mubr.msk.f32.vlgmr.msra.gmra.mrb[0].mxu1 %vm1817_vm4, %v555_v2 }
 0x327   : > { %771 = vmatprep.mubr.f32.mxu1 %v1269_v10 }
 0x32a   : > { %972 = vmatmul.mubr.msk.f32.gmra.mrb[2].mxu1 %vm1818_vm7, %v556_v33 }
 0x32b   : > { %777 = vmatprep.mubr.f32.mxu1 %v1269_v10 }
 0x32e   : > { %973 = vmatmul.mubr.msk.f32.gmra.mrb[4].mxu1 %vm1819_vm9, %v557_v39 }
 0x32f   : > { %783 = vmatprep.mubr.f32.mxu1 %v1269_v10  ;;  %v672_v54 = vpop.permute.xlu1 %671 }
 0x332   : > { %974 = vmatmul.mubr.msk.f32.gmra.mrb[6].mxu1 %vm1820_vm10, %v558_v40 }
 0x333   : > { %v682_v55 = vpop.permute.xlu1 %681  ;;  %v677_v56 = vpop.permute.xlu0 %676 }
 0x337   : > { %v687_v60 = vpop.permute.xlu1 %686  ;;  %v813_v1 = vpop.permute.xlu0 %812 }
 0x33b   : > { %v818_v17 = vpop.permute.xlu1 %817  ;;  %v823_v30 = vpop.permute.xlu0 %822 }
 0x33f   : > { %v828_v29 = vpop.permute.xlu1 %827 }
 0x3f9   : > { %v767_v57 = vpop.f32.mrb[0].mxu1 }
 0x3fa   : > { %v768_v10 = vadd.f32 %v767_v57, %v672_v54  ;;  %v769_v58 = vpop.f32.mrb[1].mxu1 }
 0x3fb   : > { %v770_v59 = vadd.f32 %v769_v58, %v672_v54 }
 0x3fc   : > { %v790_v61 = vmax.f32 %v768_v10, 0.0 }
 0x3fd   : > { %v791_v63 = vmax.f32 %v770_v59, 0.0  ;;  %v773_v0 = vpop.f32.mrb[2].mxu1 }
 0x3fe   : > { %v798_v3 = vadd.f32 %v790_v61, %v522_v43  ;;  %v774_v4 = vadd.f32 %v773_v0, %v677_v56  ;;  %v775_v5 = vpop.f32.mrb[3].mxu1 }
 0x3ff   : > { %v799_v6 = vadd.f32 %v791_v63, %v524_v47  ;;  %v776_v7 = vadd.f32 %v775_v5, %v677_v56 }
 0x400   : > { %v792_v8 = vmax.f32 %v774_v4, 0.0  ;;  %v830_v9 = vadd.f32 %v813_v1, %v798_v3 }
 0x401   : > { %v793_v11 = vmax.f32 %v776_v7, 0.0  ;;  %v831_v12 = vadd.f32 %v813_v1, %v799_v6  ;;  %v779_v13 = vpop.f32.mrb[4].mxu1 }
 0x402   : > { %838 = vst [vmem:[%s1713_s20] sm:$0xff] %v830_v9  ;;  %v800_v14 = vadd.f32 %v792_v8, %v528_v48  ;;  %v780_v15 = vadd.f32 %v779_v13, %v682_v55  ;;  %v781_v16 = vpop.f32.mrb[5].mxu1 }
 0x403   : > { %839 = vst [vmem:[%s1713_s20 + $0x8] sm:$0xff] %v831_v12  ;;  %v801_v18 = vadd.f32 %v793_v11, %v530_v49  ;;  %v782_v19 = vadd.f32 %v781_v16, %v682_v55 }
 0x404   : > { %v832_v20 = vadd.f32 %v818_v17, %v800_v14  ;;  %v794_v21 = vmax.f32 %v780_v15, 0.0 }
 0x405   : > { %v833_v22 = vadd.f32 %v818_v17, %v801_v18  ;;  %v795_v23 = vmax.f32 %v782_v19, 0.0  ;;  %v785_v24 = vpop.f32.mrb[6].mxu1 }
 0x406   : > { %840 = vst [vmem:[%s1713_s20 + $0x10] sm:$0xff] %v832_v20  ;;  %v802_v25 = vadd.f32 %v794_v21, %v534_v50  ;;  %v786_v27 = vadd.f32 %v785_v24, %v687_v60  ;;  %v787_v28 = vpop.f32.mrb[7].mxu1 }
 0x407   : > { %841 = vst [vmem:[%s1713_s20 + $0x18] sm:$0xff] %v833_v22  ;;  %v803_v31 = vadd.f32 %v795_v23, %v536_v51  ;;  %v788_v26 = vadd.f32 %v787_v28, %v687_v60 }
 0x408   : > { %v834_v32 = vadd.f32 %v823_v30, %v802_v25  ;;  %v796_v34 = vmax.f32 %v786_v27, 0.0 }
 0x409   : > { %v835_v35 = vadd.f32 %v823_v30, %v803_v31  ;;  %v797_v36 = vmax.f32 %v788_v26, 0.0 }
 0x40a   : > { %842 = vst [vmem:[%s1713_s20 + $0x20] sm:$0xff] %v834_v32  ;;  %v804_v37 = vadd.f32 %v796_v34, %v540_v52 }
 0x40b   : > { %843 = vst [vmem:[%s1713_s20 + $0x28] sm:$0xff] %v835_v35  ;;  %v805_v38 = vadd.f32 %v797_v36, %v542_v53 }
 0x40c   : > { %v836_v41 = vadd.f32 %v828_v29, %v804_v37 }
 0x40d   : > { %v837_v42 = vadd.f32 %v828_v29, %v805_v38 }
 0x40e   : > { %844 = vst [vmem:[%s1713_s20 + $0x30] sm:$0xff] %v836_v41 }
 0x40f   : > { %845 = vst [vmem:[%s1713_s20 + $0x38] sm:$0xff] %v837_v42 }
 0x410   : > { %1206 = shalt.err (!%p1203_p4)
}
 0x411   : > { %s1207_s16 = scalar_lea.hbm %s1728_s17, 1024  ;;  %s1211_s8 = scalar_lea.hbm %s1780_s6, 2048 }
 0x412   : > { %p1208_p5 = scmp.ne.s32.totalorder %s1728_s17, %s1207_s16  ;;  %p1212_p0 = scmp.lt.u32.totalorder %s1728_s17, %s1780_s6 }
 0x413   : > { %p1213_p1 = scmp.lt.u32.totalorder %s1211_s8, %s1207_s16  ;;  %p1215_p6 = scmp.lt.u32.totalorder %s1207_s16, %s1728_s17 }
 0x414   : > { %p1209_p8 = pnand %p1208_p5, %p1821_p11 }
 0x415   : > { %p1214_p3 = por %p1213_p1, %p1212_p0 }
 0x416   : > { %p1210_p9 = pneg %p1209_p8 }
 0x417   : > { %p1216_p12 = por %p1215_p6, %p1214_p3 }
 0x419   : > { %p1217_p13 = pnand %p1216_p12, %p1210_p9 }
 0x41b   : > { %1220 = shalt.err (!%p1217_p13)
}
 0x41c   : > { %s1275_s14 = smov 256   ;;  %s1276_s15 = smov 16  }
 0x41d   : > { %1032 = dma.vmem_to_hbm [thread:$0]  (%p1821_p11), %s1722_s12, 1024, %s1728_s17, %s847_s25, %s1275_s14, %s1275_s14, %s1276_s15  }
 0x41e PF: > { %s875_s28 = sand.u32 1, %s1247_s21   ;;  %p1822_p7 = scmp.ne.s32.totalorder %s1790_s10, 0 }
 0x41f   : > { %p1823_p10 = scmp.ge.s32.totalorder %s1259_s24, 2  ;;  %s876_s29 = scalar_lea.sflag [#allocation4], %s875_s28 }
 0x421   : > { %p1039_p2 = pnand %p1823_p10, %p1822_p7 }
 0x423   : > { %1242 = dma.done.wait (!%p1039_p2), %s876_s29, 1024  }
 0x424   : > { %1244 = vsyncadd (!%p1039_p2), %s876_s29, 4294966272  ;;  %p19_p4 = scmp.ge.s32.totalorder %s1337_s27, 4   ;;  %s1824_s21 = smov %s1251_s22 }
 0x425   : > { %s1825_s22 = smov %s1255_s23  ;;  %s1826_s23 = smov %s1349_s30 }
 0x426   : > { %s1827_s24 = smov %s1337_s27  ;;  %21 = sbr.rel (!%p19_p4) target bundleno = 5 (0x5), region = 89 }
 0x42d   :  { %881 = vsyncpa [#allocation3], 1 }
 0x42e   :  { %883 = vsyncpa [#allocation3 + $0x1], 1 }
 0x42f   :  { %884 = vsyncpa [#allocation4], 1 }
 0x430   :  { %886 = vsyncpa [#allocation4 + $0x1], 1 }

</bundles_post_ra>
